<compile_context>
chip_gen: v5e
topology: v5e:2x2
jax: 0.10.0
libtpu: 0.0.40
codegen_flags: <defaults>
</compile_context>

<pallas_src>
import jax
import jax.numpy as jnp
from jax.experimental import pallas as pl
from jax.experimental.pallas import tpu as pltpu


def _identity_kernel(x_ref, o_ref):
    # Hot path: straight VMEM tile copy (the module performs no compute).
    o_ref[...] = x_ref[...]


def _choose_tile_rows(rows: int, cols: int, itemsize: int) -> int:
    """Pick a row-tile size giving ~2 MiB contiguous blocks.

    Keeps 4 double-buffered copies (in + out) well under the scoped VMEM
    limit on all generations (v5e/v6e: 128 MiB, v7x: 64 MiB physical).
    """
    target_bytes = 2 * 1024 * 1024
    row_bytes = max(1, cols * itemsize)
    max_rows_per_block = max(1, target_bytes // row_bytes)
    if max_rows_per_block >= rows:
        # Whole array fits in one small block (full-extent dims are exempt
        # from the (8,128) divisibility rule).
        return rows
    # Otherwise use a multiple of 8 sublanes (>= 8) to satisfy tiling rules.
    return max(8, (max_rows_per_block // 8) * 8)


def dct_gru_forward(x_in, dim=None, GRU_layers=None):
    """Pallas implementation of DCT_GRU.forward (identity pass-through).

    Args:
      x_in: array of shape (B, C, H, W), NCHW layout.
      dim, GRU_layers: ignored (the reference __init__ creates no parameters).

    Returns:
      Array identical to x_in (shape, dtype, values).
    """
    del dim, GRU_layers  # no parameters in the reference module
    B, C, H, W = x_in.shape

    # Flatten to a lane-dense 2-D slab: rows = B*C, cols = H*W (contiguous).
    rows = B * C
    cols = H * W
    x2d = x_in.reshape(rows, cols)

    itemsize = jnp.dtype(x_in.dtype).itemsize
    tile_r = _choose_tile_rows(rows, cols, itemsize)
    grid = (pl.cdiv(rows, tile_r),)

    nbytes = rows * cols * itemsize
    cost = pl.CostEstimate(flops=0, transcendentals=0, bytes_accessed=2 * nbytes)

    out2d = pl.pallas_call(
        _identity_kernel,
        out_shape=jax.ShapeDtypeStruct((rows, cols), x_in.dtype),
        grid_spec=pltpu.PrefetchScalarGridSpec(
            num_scalar_prefetch=0,
            grid=grid,
            # Row tiles with full column extent: fully contiguous HBM DMAs
            # and wide, unmasked lane-dense stores.
            in_specs=[pl.BlockSpec((tile_r, cols), lambda i: (i, 0))],
            out_specs=pl.BlockSpec((tile_r, cols), lambda i: (i, 0)),
        ),
        compiler_params=pltpu.CompilerParams(
            # Parallel row axis: shardable across the 2 TCs on v7x; harmless
            # elsewhere.
            dimension_semantics=("parallel",),
        ),
        cost_estimate=cost,
    )(x2d)

    return out2d.reshape(B, C, H, W)


if __name__ == "__main__":
    key = jax.random.PRNGKey(0)
    # Small shapes consistent with an NCHW feature map: B=2, C=4, H=W=16.
    x = jax.random.normal(key, (2, 4, 16, 16), dtype=jnp.float32)

    y = dct_gru_forward(x, dim=4, GRU_layers=1)
    y = jax.block_until_ready(y)

    # Sanity check: identity semantics (shape, dtype, values).
    assert y.shape == x.shape
    assert y.dtype == x.dtype
    assert bool(jnp.all(y == x))

    print("KERNEL_OK")
</pallas_src>

<mosaic_0001>
module attributes {stable_mosaic.version = 11 : i64} {
  func.func @_identity_kernel(%arg0: i32, %arg1: memref<8x256xf32, #tpu.memory_space<vmem>>, %arg2: memref<8x256xf32, #tpu.memory_space<vmem>>) attributes {dimension_semantics = [#tpu.dimension_semantics<parallel>], iteration_bounds = array<i64: 1>, scalar_prefetch = 0 : i64, scratch_operands = 0 : i64, tpu.core_type = #tpu.core_type<tc>, window_params = [{transform_indices = @transform_0, window_bounds = array<i64: 8, 256>}, {transform_indices = @transform_1, window_bounds = array<i64: 8, 256>}]} {
    %c0 = arith.constant 0 : index
    %c0_0 = arith.constant 0 : index
    %0 = vector.load %arg1[%c0, %c0_0] : memref<8x256xf32, #tpu.memory_space<vmem>>, vector<8x256xf32>
    %c0_1 = arith.constant 0 : index
    %c0_2 = arith.constant 0 : index
    %1 = vector.load %arg2[%c0_1, %c0_2] : memref<8x256xf32, #tpu.memory_space<vmem>>, vector<8x256xf32>
    tpu.vector_store %arg2[%c0_1, %c0_2], %0 {strides = array<i32>} : memref<8x256xf32, #tpu.memory_space<vmem>>, vector<8x256xf32>,
    return
  }
  func.func @transform_0(%arg0: i32) -> (i32, i32) {
    %c0_i32 = arith.constant 0 : i32
    %c0_i32_0 = arith.constant 0 : i32
    return %arg0, %c0_i32 : i32, i32
  }
  func.func @transform_1(%arg0: i32) -> (i32, i32) {
    %c0_i32 = arith.constant 0 : i32
    %c0_i32_0 = arith.constant 0 : i32
    return %arg0, %c0_i32 : i32, i32
  }
}

</mosaic_0001>

<bundles_post_ra>
// kernel: tpu_custom_call.1
= control target key start
LH: loop header
LB: loop body
LE: loop exit
PB: predicated region body
PF: predicated region fallthrough
CT: control target
= control target key end

     0   :  { %6 = vsyncpa [#allocation3], 0  ;;  %s116_s0 = inlined_call_operand.hbm [shape: f32[8,256], index: 0, kind: input, shape index: {}]   ;;  %s117_s1 = inlined_call_operand.hbm [shape: f32[8,256], index: 1, kind: output, shape index: {}]  }
   0x1   :  { %7 = vsyncpa [#allocation4], 0  ;;  %s13_s8 = sshll.u32 %s116_s0, 4  ;;  %s98_s9 = smov [#allocation2]   ;;  %s14_s8 = int_to_ptr.hbm [resolvable:$true] %s13_s8 }
   0x2   :  { %s15_s10 = sshll.u32 %s98_s9, 4  ;;  %s16_s10 = int_to_ptr.vmem [resolvable:$true] %s15_s10 }
   0x3   :  { %18 = dma.hbm_to_vmem [thread:$0]  %s14_s8, 256, %s16_s10, [#allocation3]  }
   0x4   :  { %94 = dma.done.wait [#allocation3], 256  }
   0x5   :  { %95 = vsyncadd [#allocation3], 4294967040  ;;  %s99_s11 = smov [#allocation5]   ;;  %s34_s15 = sshll.u32 %s117_s1, 4  ;;  %v23_v0 = vld [vmem:[#allocation2] sm:$0xff]  ;;  %v24_v1 = vld [vmem:[#allocation2 + $0x8] sm:$0xff]  ;;  %s35_s15 = int_to_ptr.hbm [resolvable:$true] %s34_s15 }
   0x6   :  { %s32_s12 = sshll.u32 %s99_s11, 4  ;;  %25 = vst [vmem:[#allocation5] sm:$0xff] %v23_v0  ;;  %s33_s12 = int_to_ptr.vmem [resolvable:$true] %s32_s12 }
   0x7   :  { %26 = vst [vmem:[#allocation5 + $0x8] sm:$0xff] %v24_v1 }
   0x8   :  { %37 = dma.vmem_to_hbm [thread:$0]  %s33_s12, 256, %s35_s15, [#allocation4]  }
   0x9   :  { %96 = dma.done.wait [#allocation4], 256  }
   0xa   :  { %97 = vsyncadd [#allocation4], 4294967040 }
   0xb   :  { %42 = vsyncpa [#allocation3], 1 }
   0xc   :  { %43 = vsyncpa [#allocation4], 1 }

</bundles_post_ra>
